<compile_context>
chip_gen: v5e
topology: v5e:2x2
jax: 0.10.0
libtpu: 0.0.40
codegen_flags: <defaults>
</compile_context>

<pallas_src>
import functools

import jax
import jax.numpy as jnp
from jax.experimental import pallas as pl
from jax.experimental.pallas import tpu as pltpu


# Per-buffer weight-slab budget.  12 MiB x2 (double-buffered) + activations/outputs stays
# comfortably inside the vmem_limit_bytes we request below on every generation (v5e/v6e/v7x).
_MAX_WEIGHT_SLAB_BYTES = 12 * 1024 * 1024
_VMEM_LIMIT_CAP_BYTES = 48 * 1024 * 1024      # below v7x's 64 MiB physical VMEM


def _choose_tile_h(hidden_size, k, itemsize, *, min_tiles=2):
    """Pick the hidden-tile size TH.

    Prefers the largest multiple of 128 dividing H whose per-buffer weight slab
    (K * 4*TH * itemsize) fits the budget *and* yields at least `min_tiles` grid steps
    (so v7x's two TensorCores both get work).  Small / non-128-aligned H falls back to a
    single full-width tile.
    """
    if hidden_size % 128 != 0:
        return hidden_size
    candidates = [th for th in (2048, 1024, 512, 256, 128) if hidden_size % th == 0]

    def fits(th):
        return k * 4 * th * itemsize <= _MAX_WEIGHT_SLAB_BYTES

    # Largest TH that fits and still gives >= min_tiles tiles.
    for th in candidates:
        if fits(th) and hidden_size // th >= min_tiles:
            return th
    # Can't get min_tiles at 128 granularity (small H): largest fitting TH, else 128.
    for th in candidates:
        if fits(th):
            return th
    return 128


def prepare_lstm_params(W_ih, b_ih, W_hh, b_hh, *, param_dtype=jnp.bfloat16, tile_h=None):
    """One-time parameter preparation (hoisted out of the per-step hot path).

    Returns:
      w_tiles: (num_tiles, K, 4*TH) in param_dtype; slab j holds the [f,i,g,o] columns
               for hidden slice [j*TH, (j+1)*TH), rows = [input rows ; hidden rows].
      b_tiles: (num_tiles, 1, 4*TH) float32 fused bias (b_ih + b_hh), same column layout.
    """
    four_h, input_size = W_ih.shape
    hidden_size = four_h // 4
    assert W_hh.shape == (four_h, hidden_size)
    k = input_size + hidden_size

    if tile_h is None:
        tile_h = _choose_tile_h(hidden_size, k, jnp.dtype(param_dtype).itemsize)
    assert hidden_size % tile_h == 0
    num_tiles = hidden_size // tile_h

    # Fused weight (K, 4H); column gate order is the module's [f, i, g, o].
    w_cat = jnp.concatenate([W_ih.T, W_hh.T], axis=0).astype(param_dtype)
    bias = (b_ih + b_hh).astype(jnp.float32)

    # Re-tile columns so each grid step streams one contiguous (K, 4*TH) slab.
    w_tiles = (w_cat.reshape(k, 4, num_tiles, tile_h)
                    .transpose(2, 0, 1, 3)
                    .reshape(num_tiles, k, 4 * tile_h))
    b_tiles = (bias.reshape(4, num_tiles, tile_h)
                   .transpose(1, 0, 2)
                   .reshape(num_tiles, 1, 4 * tile_h))
    return w_tiles, b_tiles


def _lstm_cell_kernel(xh_ref, w_ref, b_ref, c_ref, h_out_ref, c_out_ref):
    th = c_ref.shape[-1]
    # One fused MXU pass for this hidden tile: (B, K) @ (K, 4*TH) -> (B, 4*TH), f32 accumulate.
    # (No Precision.HIGHEST: bf16 params are unaffected and the f32-param fallback avoids
    #  the multi-pass MXU algorithm; f32 accumulation comes from preferred_element_type.)
    gates = jnp.dot(
        xh_ref[...], w_ref[...],
        preferred_element_type=jnp.float32,
    ) + b_ref[...]                                 # (1, 4*TH) bias broadcast over batch

    # Gate order matches the reference module: [f, i, g, o].
    f = jax.nn.sigmoid(gates[:, 0 * th:1 * th])
    i = jax.nn.sigmoid(gates[:, 1 * th:2 * th])
    g = jnp.tanh(gates[:, 2 * th:3 * th])
    o = jax.nn.sigmoid(gates[:, 3 * th:4 * th])

    c_new = f * c_ref[...].astype(jnp.float32) + i * g
    h_new = o * jnp.tanh(c_new)

    c_out_ref[...] = c_new.astype(c_out_ref.dtype)
    h_out_ref[...] = h_new.astype(h_out_ref.dtype)


def lstm_cell_pallas(x, h, c, w_tiles, b_tiles):
    """Hot-path call.  w_tiles / b_tiles come from prepare_lstm_params (done once)."""
    B = x.shape[0]
    num_tiles, k, four_th = w_tiles.shape
    tile_h = four_th // 4
    hidden_size = num_tiles * tile_h
    assert x.shape[1] + hidden_size == k
    assert h.shape == (B, hidden_size) and c.shape == (B, hidden_size)

    param_dtype = w_tiles.dtype
    p_bytes = jnp.dtype(param_dtype).itemsize
    out_bytes = jnp.dtype(x.dtype).itemsize

    # Activation prep only (B x K, tiny); no per-call weight transposes.
    xh = jnp.concatenate([x, h], axis=-1).astype(param_dtype)

    # Many small 128-wide slabs (big K forced TH down): use 3-deep buffering on the weight
    # stream to hide DMA issue latency between steps.  Otherwise default double-buffering.
    w_slab_bytes = k * four_th * p_bytes
    weight_buffers = 3 if (num_tiles >= 4 and w_slab_bytes <= (2 << 20)) else 2

    # vmem_limit_bytes from actual buffer requirements (+ headroom), capped well below
    # v7x's 64 MiB physical VMEM; also raises v5e's 16 MiB scoped default when needed.
    vmem_needed = (weight_buffers * (w_slab_bytes + four_th * 4)   # weights + f32 bias
                   + 2 * B * k * p_bytes                           # xh (double-buffered)
                   + 2 * 3 * B * tile_h * out_bytes)               # c in, h_out, c_out
    vmem_limit_bytes = int(min(max(vmem_needed + (8 << 20), 16 << 20),
                               _VMEM_LIMIT_CAP_BYTES))

    cost = pl.CostEstimate(
        flops=int(2 * B * k * 4 * hidden_size),
        transcendentals=int(5 * B * hidden_size),
        bytes_accessed=int(w_tiles.size * p_bytes + b_tiles.size * 4 + xh.size * p_bytes
                           + 3 * B * hidden_size * out_bytes),
    )

    w_spec = pl.BlockSpec((pl.Squeezed(), k, four_th), lambda j: (j, 0, 0),
                          pipeline_mode=pl.Buffered(weight_buffers))
    b_spec = pl.BlockSpec((pl.Squeezed(), 1, four_th), lambda j: (j, 0, 0))

    h_out, c_out = pl.pallas_call(
        _lstm_cell_kernel,
        out_shape=(
            jax.ShapeDtypeStruct((B, hidden_size), x.dtype),
            jax.ShapeDtypeStruct((B, hidden_size), x.dtype),
        ),
        grid_spec=pltpu.PrefetchScalarGridSpec(
            num_scalar_prefetch=0,
            grid=(num_tiles,),
            in_specs=[
                pl.BlockSpec((B, k), lambda j: (0, 0)),      # [x, h] — resident
                w_spec,                                       # weight slab — streamed
                b_spec,                                       # bias slab
                pl.BlockSpec((B, tile_h), lambda j: (0, j)),  # c tile
            ],
            out_specs=(
                pl.BlockSpec((B, tile_h), lambda j: (0, j)),
                pl.BlockSpec((B, tile_h), lambda j: (0, j)),
            ),
        ),
        compiler_params=pltpu.CompilerParams(
            dimension_semantics=("parallel",),   # independent hidden tiles (v7x 2 TCs)
            vmem_limit_bytes=vmem_limit_bytes,
        ),
        cost_estimate=cost,
    )(xh, w_tiles, b_tiles, c)
    return h_out, c_out


def lstm_cell_ref(x, h, c, W_ih, b_ih, W_hh, b_hh):
    # Pure-JAX reference mirroring the PyTorch forward (full-precision matmuls).
    hp = jax.lax.Precision.HIGHEST
    gates = (jnp.dot(x, W_ih.T, precision=hp) + b_ih
             + jnp.dot(h, W_hh.T, precision=hp) + b_hh)
    H = h.shape[1]
    f, i, g, o = (gates[:, k * H:(k + 1) * H] for k in range(4))
    f_t = jax.nn.sigmoid(f)
    i_t = jax.nn.sigmoid(i)
    g_t = jnp.tanh(g)
    o_t = jax.nn.sigmoid(o)
    c_new = f_t * c + i_t * g_t
    h_new = o_t * jnp.tanh(c_new)
    return h_new, c_new


if __name__ == "__main__":
    key = jax.random.PRNGKey(0)

    def make_case(case_key, B, input_size, hidden_size):
        kx, kh, kc, kwih, kbih, kwhh, kbhh = jax.random.split(case_key, 7)
        bound_ih = 1.0 / (input_size ** 0.5)
        bound_hh = 1.0 / (hidden_size ** 0.5)
        W_ih = jax.random.uniform(kwih, (4 * hidden_size, input_size),
                                  jnp.float32, -bound_ih, bound_ih)
        b_ih = jax.random.uniform(kbih, (4 * hidden_size,),
                                  jnp.float32, -bound_ih, bound_ih)
        W_hh = jax.random.uniform(kwhh, (4 * hidden_size, hidden_size),
                                  jnp.float32, -bound_hh, bound_hh)
        b_hh = jax.random.uniform(kbhh, (4 * hidden_size,),
                                  jnp.float32, -bound_hh, bound_hh)
        x = jax.random.normal(kx, (B, input_size), jnp.float32)
        h = jax.random.normal(kh, (B, hidden_size), jnp.float32)
        c = jax.random.normal(kc, (B, hidden_size), jnp.float32)
        return x, h, c, W_ih, b_ih, W_hh, b_hh

    # Tiny case (single full-width tile) + a 128-aligned case exercising the multi-tile grid
    # (H=512 -> TH=256, 2 tiles: both TensorCores busy on v7x).
    cases = [(2, 16, 32), (8, 128, 512)]
    # Default MXU precision in-kernel: f32-param path is ~bf16-input accurate (1e-2 tol);
    # bf16 params (the intended fast path) get the standard bf16 tolerance.
    checks = [(jnp.float32, 1e-2), (jnp.bfloat16, 5e-2)]

    case_keys = jax.random.split(key, len(cases))
    for case_key, (B, in_sz, hid) in zip(case_keys, cases):
        x, h, c, W_ih, b_ih, W_hh, b_hh = make_case(case_key, B, in_sz, hid)
        h_ref, c_ref = lstm_cell_ref(x, h, c, W_ih, b_ih, W_hh, b_hh)
        for param_dtype, tol in checks:
            w_tiles, b_tiles = prepare_lstm_params(W_ih, b_ih, W_hh, b_hh,
                                                   param_dtype=param_dtype)
            h_out, c_out = lstm_cell_pallas(x, h, c, w_tiles, b_tiles)
            jax.block_until_ready((h_out, c_out))
            assert jnp.allclose(h_out, h_ref, atol=tol, rtol=tol), (B, in_sz, hid, param_dtype)
            assert jnp.allclose(c_out, c_ref, atol=tol, rtol=tol), (B, in_sz, hid, param_dtype)

    print("KERNEL_OK")
</pallas_src>

<mosaic_0001>
module attributes {stable_mosaic.version = 11 : i64} {
  func.func @_lstm_cell_kernel(%arg0: i32, %arg1: memref<2x48xf32, #tpu.memory_space<vmem>>, %arg2: memref<1x48x128xf32, #tpu.memory_space<vmem>>, %arg3: memref<1x1x128xf32, #tpu.memory_space<vmem>>, %arg4: memref<2x32xf32, #tpu.memory_space<vmem>>, %arg5: memref<2x32xf32, #tpu.memory_space<vmem>>, %arg6: memref<2x32xf32, #tpu.memory_space<vmem>>) attributes {dimension_semantics = [#tpu.dimension_semantics<parallel>], iteration_bounds = array<i64: 1>, scalar_prefetch = 0 : i64, scratch_operands = 0 : i64, tpu.core_type = #tpu.core_type<tc>, window_params = [{pipeline_mode = #tpu.pipeline_mode<synchronous>, transform_indices = @transform_0, window_bounds = array<i64: 2, 48>}, {pipeline_mode = #tpu.pipeline_mode<double_buffered>, transform_indices = @transform_1, window_bounds = array<i64: 1, 48, 128>}, {transform_indices = @transform_2, window_bounds = array<i64: 1, 1, 128>}, {transform_indices = @transform_3, window_bounds = array<i64: 2, 32>}, {transform_indices = @transform_4, window_bounds = array<i64: 2, 32>}, {transform_indices = @transform_5, window_bounds = array<i64: 2, 32>}]} {
    %c0 = arith.constant 0 : index
    %c0_0 = arith.constant 0 : index
    %0 = vector.load %arg1[%c0, %c0_0] : memref<2x48xf32, #tpu.memory_space<vmem>>, vector<2x48xf32>
    %c0_1 = arith.constant 0 : index
    %c0_2 = arith.constant 0 : index
    %c0_3 = arith.constant 0 : index
    %1 = vector.load %arg2[%c0_1, %c0_2, %c0_3] : memref<1x48x128xf32, #tpu.memory_space<vmem>>, vector<1x48x128xf32>
    %2 = vector.shape_cast %1 : vector<1x48x128xf32> to vector<48x128xf32>
    %cst = arith.constant dense<0.000000e+00> : vector<2x128xf32>
    %3 = tpu.matmul %0, %2, %cst {dimension_numbers = #tpu.dot_dimension_numbers<[1], [0], [0], [1], [0, 0, 1, 1], [], []>} : vector<2x48xf32>, vector<48x128xf32>, vector<2x128xf32> -> vector<2x128xf32>
    %c0_4 = arith.constant 0 : index
    %c0_5 = arith.constant 0 : index
    %c0_6 = arith.constant 0 : index
    %4 = vector.load %arg3[%c0_4, %c0_5, %c0_6] : memref<1x1x128xf32, #tpu.memory_space<vmem>>, vector<1x1x128xf32>
    %5 = vector.shape_cast %4 : vector<1x1x128xf32> to vector<1x128xf32>
    %6 = vector.broadcast %5 : vector<1x128xf32> to vector<2x128xf32>
    %7 = arith.addf %3, %6 : vector<2x128xf32>
    %8 = vector.extract_strided_slice %7 {offsets = [0, 0], sizes = [2, 32], strides = [1, 1]} : vector<2x128xf32> to vector<2x32xf32>
    %9 = arith.negf %8 : vector<2x32xf32>
    %10 = math.exp %9 : vector<2x32xf32>
    %cst_7 = arith.constant 1.000000e+00 : f32
    %11 = vector.broadcast %cst_7 : f32 to vector<2x32xf32>
    %12 = arith.addf %11, %10 : vector<2x32xf32>
    %13 = arith.divf %11, %12 : vector<2x32xf32>
    %14 = vector.extract_strided_slice %7 {offsets = [0, 32], sizes = [2, 32], strides = [1, 1]} : vector<2x128xf32> to vector<2x32xf32>
    %15 = arith.negf %14 : vector<2x32xf32>
    %16 = math.exp %15 : vector<2x32xf32>
    %cst_8 = arith.constant 1.000000e+00 : f32
    %17 = vector.broadcast %cst_8 : f32 to vector<2x32xf32>
    %18 = arith.addf %17, %16 : vector<2x32xf32>
    %19 = arith.divf %17, %18 : vector<2x32xf32>
    %20 = vector.extract_strided_slice %7 {offsets = [0, 64], sizes = [2, 32], strides = [1, 1]} : vector<2x128xf32> to vector<2x32xf32>
    %21 = math.tanh %20 : vector<2x32xf32>
    %22 = vector.extract_strided_slice %7 {offsets = [0, 96], sizes = [2, 32], strides = [1, 1]} : vector<2x128xf32> to vector<2x32xf32>
    %23 = arith.negf %22 : vector<2x32xf32>
    %24 = math.exp %23 : vector<2x32xf32>
    %cst_9 = arith.constant 1.000000e+00 : f32
    %25 = vector.broadcast %cst_9 : f32 to vector<2x32xf32>
    %26 = arith.addf %25, %24 : vector<2x32xf32>
    %27 = arith.divf %25, %26 : vector<2x32xf32>
    %c0_10 = arith.constant 0 : index
    %c0_11 = arith.constant 0 : index
    %28 = vector.load %arg4[%c0_10, %c0_11] : memref<2x32xf32, #tpu.memory_space<vmem>>, vector<2x32xf32>
    %29 = arith.mulf %13, %28 : vector<2x32xf32>
    %30 = arith.mulf %19, %21 : vector<2x32xf32>
    %31 = arith.addf %29, %30 : vector<2x32xf32>
    %32 = math.tanh %31 : vector<2x32xf32>
    %33 = arith.mulf %27, %32 : vector<2x32xf32>
    %c0_12 = arith.constant 0 : index
    %c0_13 = arith.constant 0 : index
    %34 = vector.load %arg6[%c0_12, %c0_13] : memref<2x32xf32, #tpu.memory_space<vmem>>, vector<2x32xf32>
    tpu.vector_store %arg6[%c0_12, %c0_13], %31 {strides = array<i32>} : memref<2x32xf32, #tpu.memory_space<vmem>>, vector<2x32xf32>,
    %c0_14 = arith.constant 0 : index
    %c0_15 = arith.constant 0 : index
    %35 = vector.load %arg5[%c0_14, %c0_15] : memref<2x32xf32, #tpu.memory_space<vmem>>, vector<2x32xf32>
    tpu.vector_store %arg5[%c0_14, %c0_15], %33 {strides = array<i32>} : memref<2x32xf32, #tpu.memory_space<vmem>>, vector<2x32xf32>,
    return
  }
  func.func @transform_0(%arg0: i32) -> (i32, i32) {
    %c0_i32 = arith.constant 0 : i32
    %c0_i32_0 = arith.constant 0 : i32
    %c0_i32_1 = arith.constant 0 : i32
    return %c0_i32, %c0_i32_0 : i32, i32
  }
  func.func @transform_1(%arg0: i32) -> (i32, i32, i32) {
    %c0_i32 = arith.constant 0 : i32
    %c0_i32_0 = arith.constant 0 : i32
    %c0_i32_1 = arith.constant 0 : i32
    return %arg0, %c0_i32, %c0_i32_0 : i32, i32, i32
  }
  func.func @transform_2(%arg0: i32) -> (i32, i32, i32) {
    %c0_i32 = arith.constant 0 : i32
    %c0_i32_0 = arith.constant 0 : i32
    %c0_i32_1 = arith.constant 0 : i32
    return %arg0, %c0_i32, %c0_i32_0 : i32, i32, i32
  }
  func.func @transform_3(%arg0: i32) -> (i32, i32) {
    %c0_i32 = arith.constant 0 : i32
    %c0_i32_0 = arith.constant 0 : i32
    return %c0_i32, %arg0 : i32, i32
  }
  func.func @transform_4(%arg0: i32) -> (i32, i32) {
    %c0_i32 = arith.constant 0 : i32
    %c0_i32_0 = arith.constant 0 : i32
    return %c0_i32, %arg0 : i32, i32
  }
  func.func @transform_5(%arg0: i32) -> (i32, i32) {
    %c0_i32 = arith.constant 0 : i32
    %c0_i32_0 = arith.constant 0 : i32
    return %c0_i32, %arg0 : i32, i32
  }
}

</mosaic_0001>

<bundles_post_ra>
// kernel: tpu_custom_call.1
= control target key start
LH: loop header
LB: loop body
LE: loop exit
PB: predicated region body
PF: predicated region fallthrough
CT: control target
= control target key end

     0   :  { %11 = vsyncpa [#allocation3], 0  ;;  %s388_s0 = inlined_call_operand.hbm [shape: f32[2,48], index: 0, kind: input, shape index: {}]   ;;  %s389_s1 = inlined_call_operand.hbm [shape: f32[1,48,128], index: 1, kind: input, shape index: {}]   ;;  %s390_s2 = inlined_call_operand.hbm [shape: f32[1,1,128], index: 2, kind: input, shape index: {}]   ;;  %s391_s3 = inlined_call_operand.vmem [shape: f32[2,32], index: 3, kind: input, shape index: {}]   ;;  %s392_s4 = inlined_call_operand.hbm [shape: f32[2,32], index: 4, kind: output, shape index: {0}]   ;;  %s393_s5 = inlined_call_operand.hbm [shape: f32[2,32], index: 5, kind: output, shape index: {1}]  }
   0x1   :  { %12 = vsyncpa [#allocation6], 0 }
   0x2   :  { %13 = vsyncpa [#allocation4], 0  ;;  %s30_s20 = sshll.u32 %s389_s1, 4  ;;  %s31_s20 = int_to_ptr.hbm [resolvable:$true] %s30_s20 }
   0x3   :  { %14 = vsyncpa [#allocation10], 0  ;;  %s326_s21 = smov [#allocation5]   ;;  %s20_s25 = sshll.u32 %s388_s0, 4  ;;  %s21_s25 = int_to_ptr.hbm [resolvable:$true] %s20_s25 }
   0x4   :  { %s32_s22 = sshll.u32 %s326_s21, 4  ;;  %s327_s26 = smov 128   ;;  %s33_s22 = int_to_ptr.vmem [resolvable:$true] %s32_s22 }
   0x5   :  { %s328_s27 = smov 8   ;;  %s329_s28 = smov [#allocation2]  }
   0x6   :  { %38 = dma.hbm_to_vmem [thread:$0]  %s31_s20, 768, %s33_s22, [#allocation6], %s327_s26, %s327_s26, %s328_s27  }
   0x7   :  { %s22_s29 = sshll.u32 %s329_s28, 4  ;;  %s44_s7 = sshll.u32 %s390_s2, 4  ;;  %s23_s29 = int_to_ptr.vmem [resolvable:$true] %s22_s29  ;;  %s45_s7 = int_to_ptr.hbm [resolvable:$true] %s44_s7 }
   0x8   :  { %25 = dma.hbm_to_vmem [thread:$0]  %s21_s25, 32, %s23_s29, [#allocation3]  }
   0x9   :  { %s330_s1 = smov [#allocation7]  }
   0xa   :  { %s46_s8 = sshll.u32 %s330_s1, 4  ;;  %s47_s8 = int_to_ptr.vmem [resolvable:$true] %s46_s8 }
   0xb   :  { %49 = dma.hbm_to_vmem [thread:$0]  %s45_s7, 16, %s47_s8, [#allocation6]  }
   0xc   :  { %318 = dma.done.wait [#allocation3], 32  }
   0xd   :  { %319 = vsyncadd [#allocation3], 4294967264 }
   0xe   :  { %320 = dma.done.wait [#allocation6], 784  }
   0xf   :  { %321 = vsyncadd [#allocation6], 4294966512  ;;  %v70_v0 = vld [vmem:[#allocation5 + $0x28] sm:$0xff]  ;;  %v69_v1 = vld [vmem:[#allocation5 + $0x20] sm:$0xff]  ;;  %vm75_vm0 = vcmask 392192   ;;  %s331_s0 = smov 96  }
  0x10   :  { %89 = vmatpush.msra.mxu0 %v70_v0  ;;  %v68_v2 = vld [vmem:[#allocation5 + $0x18] sm:$0xff]  ;;  %v67_v3 = vld [vmem:[#allocation5 + $0x10] sm:$0xff]  ;;  %v66_v4 = vld [vmem:[#allocation5 + $0x8] sm:$0xff]  ;;  %vm137_vm5 = vcmask 254976   ;;  %s332_s10 = smov [#allocation9]   ;;  %s162_s14 = sshll.u32 %s393_s5, 4  ;;  %s163_s14 = int_to_ptr.hbm [resolvable:$true] %s162_s14 }
  0x11   :  { %v65_v5 = vld [vmem:[#allocation5] sm:$0xff]  ;;  %v64_v6 = vld [vmem:[#allocation2] sm:$0x3]  ;;  %v189_v7 = vld [vmem:[#allocation7] ss:$0 sm:$0xff]  ;;  %s160_s11 = sshll.u32 %s332_s10, 4  ;;  %s161_s11 = int_to_ptr.vmem [resolvable:$true] %s160_s11 }
  0x12   :  { %90 = vmatpush.msra.mxu0 %v69_v1  ;;  %v119_v26 = vld [vmem:[%s391_s3] sm:$0x3]  ;;  %s333_s3 = smov 32   ;;  %s334_s15 = smov [#allocation8]  }
  0x13   :  { %s149_s16 = sshll.u32 %s334_s15, 4  ;;  %s151_s19 = sshll.u32 %s392_s4, 4  ;;  %s150_s16 = int_to_ptr.vmem [resolvable:$true] %s149_s16  ;;  %s152_s19 = int_to_ptr.hbm [resolvable:$true] %s151_s19 }
  0x14   :  { %91 = vmatpush.msra.mxu0 %v68_v2 }
  0x16   :  { %92 = vmatpush.msra.mxu0 %v67_v3 }
  0x18   :  { %93 = vmatpush.msra.mxu0 %v66_v4 }
  0x1a   :  { %94 = vmatpush.msra.mxu0 %v65_v5 }
  0x1b   :  { %178 = vmatmul.msk.f32.vlgmr.msra.gmra.mxu0 %vm75_vm0, %v64_v6 }
  0x98   :  { %v96_v8 = vpop.f32.mrf.mxu0 }
  0x99   :  { %v97_v9 = vadd.f32 %v189_v7, %v96_v8 }
  0x9b   :  { %190 = vtanh.f32 %v97_v9  ;;  %v179_v11 = vmul.f32 -1.442695, %v97_v9 }
  0x9d   :  { %192 = vpow2.f32 %v179_v11 }
  0xa1   :  { %v191_v10 = vpop.eup %190 }
  0xa2   :  { %122 = vrot.lane.b32.xlu0 %v191_v10, %s331_s0 }
  0xa3   :  { %v193_v12 = vpop.eup %192 }
  0xa4   :  { %v102_v13 = vadd.f32 1.0, %v193_v12 }
  0xa6   :  { %194 = vrcp.f32 %v102_v13  ;;  %v114_v19 = vand.u32 2147483648, %v102_v13  ;;  %vm108_vm2 = vweird.f32 %v102_v13  ;;  %v112_v20 = vand.u32 2147483647, %v102_v13 }
  0xa8   :  { %v115_v22 = vor.u32 1.1754944e-38, %v114_v19  ;;  %vm113_vm4 = vcmp.eq.f32.partialorder %v112_v20, 8.507059e+37 }
  0xac   :  { %v195_v14 = vpop.eup %194 }
  0xad   :  { %v104_v15 = vmul.f32 %v195_v14, %v102_v13  ;;  %vm109_vm1 = vweird.f32 %v195_v14 }
  0xae   :  { %vm110_vm3 = vmor %vm108_vm2, %vm109_vm1 }
  0xaf   :  { %v105_v16 = vsub.f32 1.0, %v104_v15 }
  0xb1   :  { %v106_v17 = vmul.f32 %v195_v14, %v105_v16 }
  0xb3   :  { %v107_v18 = vadd.f32 %v195_v14, %v106_v17 }
  0xb5   :  { %v111_v21 = vsel %vm110_vm3, %v195_v14, %v107_v18 }
  0xb6   :  { %v116_v24 = vsel %vm113_vm4, %v115_v22, %v111_v21 }
  0xb7   :  { %v120_v27 = vmul.f32 %v119_v26, %v116_v24 }
 0x114   :  { %v123_v23 = vpop.permute.xlu0 %122 }
 0x115   :  { %v125_v25 = vmul.f32 %v123_v23, %v116_v24 }
 0x117   :  { %127 = vrot.lane.b32.xlu0 %v125_v25, %s331_s0 }
 0x189   :  { %v128_v28 = vpop.permute.xlu0 %127 }
 0x18a   :  { %v130_v29 = vadd.f32 %v128_v28, %v120_v27 }
 0x18c   :  { %196 = vtanh.f32 %v130_v29  ;;  %138 = vst.msk [vmem:[#allocation9] sm:$0x3] %vm137_vm5, %v130_v29 }
 0x18d   :  { %165 = dma.vmem_to_hbm [thread:$0]  %s161_s11, 32, %s163_s14, [#allocation10]  }
 0x192   :  { %v197_v30 = vpop.eup %196 }
 0x193   :  { %133 = vrot.lane.b32.xlu1 %v197_v30, %s331_s0 }
 0x205   :  { %v134_v31 = vpop.permute.xlu1 %133 }
 0x206   :  { %v136_v32 = vmul.f32 %v134_v31, %v116_v24 }
 0x208   :  { %140 = vrot.lane.b32.xlu1 %v136_v32, %s333_s3 }
 0x27a   :  { %v141_v33 = vpop.permute.xlu1 %140 }
 0x27b   :  { %143 = vst.msk [vmem:[#allocation8] sm:$0x3] %vm137_vm5, %v141_v33 }
 0x27c   :  { %154 = dma.vmem_to_hbm [thread:$0]  %s150_s16, 32, %s152_s19, [#allocation4]  }
 0x27d   :  { %322 = dma.done.wait [#allocation4], 32  }
 0x27e   :  { %323 = vsyncadd [#allocation4], 4294967264 }
 0x27f   :  { %324 = dma.done.wait [#allocation10], 32  }
 0x280   :  { %325 = vsyncadd [#allocation10], 4294967264 }
 0x281   :  { %174 = vsyncpa [#allocation3], 1 }
 0x282   :  { %175 = vsyncpa [#allocation6], 1 }
 0x283   :  { %176 = vsyncpa [#allocation4], 1 }
 0x284   :  { %177 = vsyncpa [#allocation10], 1 }

</bundles_post_ra>
